<compile_context>
chip_gen: v7x
topology: tpu7x:2x2x1
jax: 0.10.0
libtpu: 0.0.40
codegen_flags: <defaults>
</compile_context>

<pallas_src>
import functools

import jax
import jax.numpy as jnp
from jax.experimental import pallas as pl
from jax.experimental.pallas import tpu as pltpu

_LANE = 128
_MIB = 1 << 20


def _chip_info():
    """Return (vmem_capacity_bytes, tensorcores_per_device), conservatively."""
    vmem, cores = 64 * _MIB, 2                       # v7x-like conservative default
    try:
        kind = jax.devices()[0].device_kind.lower()
    except Exception:
        kind = ""
    if any(t in kind for t in ("v5e", "v5 lite", "v5litepod", "v6e", "v6 lite")):
        vmem, cores = 128 * _MIB, 1                  # single-TC 128 MiB parts
    elif any(t in kind for t in ("v4", "v5p", "v5")):
        vmem, cores = 128 * _MIB, 2                  # megacore 128 MiB parts
    try:                                             # prefer the real numbers
        info = pltpu.get_tpu_info()
        v = (getattr(info, "vmem_capacity_bytes", None)
             or getattr(info, "vmem_size_bytes", None))
        if v:
            vmem = int(v)
        c = (getattr(info, "num_cores", None)
             or getattr(info, "tensorcore_count", None))
        if c:
            cores = int(c)
    except Exception:
        pass
    return vmem, cores


def _per_image_live_bytes(c, hw, itemsize):
    """VMEM simultaneously live per image per grid step (single-pass path).

    in + out blocks double-buffered by the pipeline (4x), the loaded x copy
    and the x*s product before the store (2x), plus the f32 pooling transient
    for sub-f32 inputs (explicitly budgeted).
    """
    blk = c * hw * itemsize
    live = 6 * blk
    if itemsize < 4:
        live += c * hw * 4
    return live


def _pick_block_n(n, per_img_bytes, budget_bytes, cores):
    """Largest batch-block size whose live footprint fits the budget."""
    nb = int(max(1, min(n, budget_bytes // max(1, per_img_bytes))))
    if nb >= n:
        return n
    if cores > 1:
        # Prefer a grid extent that is a multiple of the TC count so the
        # 'parallel' axis shards evenly (avoids a 2:1 imbalance on v7x).
        for cand in range(nb, max(0, nb // 2), -1):
            if pl.cdiv(n, cand) % cores == 0:
                return cand
    return nb


# ----------------------------------------------------------------------------
# Single-pass kernel: pool -> fc1 -> relu -> fc2 -> sigmoid -> scale.
# ----------------------------------------------------------------------------
def _se_kernel(x_ref, w1t_ref, w2t_ref, o_ref, *, inv_hw):
    # Squeeze: mean over the flattened spatial (lane) axis.  The f32 upcast is
    # a no-op for f32 inputs; for narrower inputs its transient is accounted
    # for in the block-size budget chosen by the wrapper.
    pooled = jnp.sum(x_ref[...].astype(jnp.float32), axis=-1) * inv_hw   # (nb, C)
    # Excitation: tiny MXU matmuls with f32 accumulation.
    h = jnp.maximum(
        jnp.dot(pooled, w1t_ref[...], preferred_element_type=jnp.float32), 0.0)
    s = jax.nn.sigmoid(
        jnp.dot(h, w2t_ref[...], preferred_element_type=jnp.float32))    # (nb, C)
    # Re-read the VMEM-resident block for the fused scale-and-store so the
    # pooled copy is not kept live across the FC chain.
    x = x_ref[...]
    o_ref[...] = (x * s.astype(x.dtype)[:, :, None]).astype(o_ref.dtype)


# ----------------------------------------------------------------------------
# Two-phase HW-tiled path (images too large to double-buffer whole).
# ----------------------------------------------------------------------------
def _pool_excite_kernel(x_ref, w1t_ref, w2t_ref, s_ref, *,
                        inv_hw, hw_total, needs_mask):
    hw_i = pl.program_id(1)

    @pl.when(hw_i == 0)
    def _init():
        s_ref[...] = jnp.zeros_like(s_ref)

    x = x_ref[...]                                            # (1, C, hwc)
    hwc = x.shape[-1]
    if needs_mask:
        # Zero out-of-range lanes of the partial trailing HW tile so they do
        # not contaminate the pooled sum (OOB reads are garbage).
        lane = jax.lax.broadcasted_iota(jnp.int32, (1, 1, hwc), 2)
        x = jnp.where(hw_i * hwc + lane < hw_total, x, 0)
    s_ref[...] += jnp.sum(x.astype(jnp.float32), axis=-1)     # (1, C) accumulate

    @pl.when(hw_i == pl.num_programs(1) - 1)
    def _finalize():
        pooled = s_ref[...] * inv_hw
        h = jnp.maximum(
            jnp.dot(pooled, w1t_ref[...], preferred_element_type=jnp.float32), 0.0)
        s_ref[...] = jax.nn.sigmoid(
            jnp.dot(h, w2t_ref[...], preferred_element_type=jnp.float32))


def _scale_kernel(x_ref, s_ref, o_ref):
    x = x_ref[...]                                            # (1, C, hwc)
    s = s_ref[...]                                            # (1, C) f32
    o_ref[...] = (x * s.astype(x.dtype)[:, :, None]).astype(o_ref.dtype)


# ----------------------------------------------------------------------------
# Wrapper.
# ----------------------------------------------------------------------------
def se_module(x_nchw, w1, w2, *, block_budget_bytes=None):
    """SEModule forward.

    x_nchw: (N, C, H, W).  w1: (C//r, C) fc1 weight (1x1 conv, squeezed).
    w2: (C, C//r) fc2 weight.  Returns (N, C, H, W), same dtype as x.
    """
    N, C, H, W = x_nchw.shape
    Cr = w1.shape[0]
    assert w1.shape == (Cr, C) and w2.shape == (C, Cr)
    HW = H * W
    inv_hw = 1.0 / HW
    itemsize = jnp.dtype(x_nchw.dtype).itemsize

    # Native layout: NCHW -> (N, C, H*W) is a free row-major view; the
    # flattened spatial axis sits on lanes.  No transposes, pads or slices.
    x = x_nchw.reshape(N, C, HW)

    # Weights, transposed once.  bf16 only when the activations are bf16.
    w_dtype = jnp.bfloat16 if x.dtype == jnp.bfloat16 else jnp.float32
    w1t = w1.T.astype(w_dtype)                                 # (C, Cr)
    w2t = w2.T.astype(w_dtype)                                 # (Cr, C)
    w_bytes = 2 * C * Cr * jnp.dtype(w_dtype).itemsize

    vmem_cap, cores = _chip_info()
    budget = block_budget_bytes or max(24 * _MIB, int(vmem_cap * 0.7))
    per_img = _per_image_live_bytes(C, HW, itemsize)

    def _vmem_limit(block_bytes):
        need = block_bytes + 4 * w_bytes + 8 * _MIB
        return int(min(max(need, 32 * _MIB), vmem_cap - 8 * _MIB))

    if per_img <= budget:
        # ---- Single-pass path: one (nb, C, HW) block per grid step. ----
        nb = _pick_block_n(N, per_img, budget, cores)
        grid = (pl.cdiv(N, nb),)
        block = (nb, C, HW)
        out = pl.pallas_call(
            functools.partial(_se_kernel, inv_hw=inv_hw),
            out_shape=jax.ShapeDtypeStruct((N, C, HW), x.dtype),
            grid_spec=pltpu.PrefetchScalarGridSpec(
                num_scalar_prefetch=0,
                grid=grid,
                in_specs=[
                    pl.BlockSpec(block, lambda n: (n, 0, 0)),
                    pl.BlockSpec((C, Cr), lambda n: (0, 0)),
                    pl.BlockSpec((Cr, C), lambda n: (0, 0)),
                ],
                out_specs=pl.BlockSpec(block, lambda n: (n, 0, 0)),
            ),
            compiler_params=pltpu.CompilerParams(
                dimension_semantics=("parallel",),
                vmem_limit_bytes=_vmem_limit(nb * per_img),
            ),
        )(x, w1t, w2t)
        return out.reshape(N, C, H, W)

    # ---- Two-phase HW-tiled path. ----
    # Phase A: tile H*W, accumulate the pooled sum into the resident (1, C)
    # output block, run the tiny FC chain on the last tile -> s = (N, C).
    # Phase B: tile H*W again and apply the per-channel scale.
    per_elem_live = 5 * itemsize + (4 if itemsize < 4 else 0)
    hwc = max(_LANE, (budget // (per_elem_live * C)) // _LANE * _LANE)
    if hwc >= HW:
        hwc = HW
    num_hw = pl.cdiv(HW, hwc)
    needs_mask = (HW % hwc) != 0
    grid = (N, num_hw)
    x_spec = pl.BlockSpec((1, C, hwc), lambda n, h: (n, 0, h))
    s_spec = pl.BlockSpec((1, C), lambda n, h: (n, 0))
    vmem_limit = _vmem_limit(per_elem_live * C * hwc)

    s = pl.pallas_call(
        functools.partial(_pool_excite_kernel, inv_hw=inv_hw,
                          hw_total=HW, needs_mask=needs_mask),
        out_shape=jax.ShapeDtypeStruct((N, C), jnp.float32),
        grid_spec=pltpu.PrefetchScalarGridSpec(
            num_scalar_prefetch=0,
            grid=grid,
            in_specs=[
                x_spec,
                pl.BlockSpec((C, Cr), lambda n, h: (0, 0)),
                pl.BlockSpec((Cr, C), lambda n, h: (0, 0)),
            ],
            out_specs=s_spec,
        ),
        compiler_params=pltpu.CompilerParams(
            dimension_semantics=("parallel", "arbitrary"),
            vmem_limit_bytes=vmem_limit,
        ),
    )(x, w1t, w2t)

    out = pl.pallas_call(
        _scale_kernel,
        out_shape=jax.ShapeDtypeStruct((N, C, HW), x.dtype),
        grid_spec=pltpu.PrefetchScalarGridSpec(
            num_scalar_prefetch=0,
            grid=grid,
            in_specs=[x_spec, s_spec],
            out_specs=x_spec,
        ),
        compiler_params=pltpu.CompilerParams(
            dimension_semantics=("parallel", "parallel"),
            vmem_limit_bytes=vmem_limit,
        ),
    )(x, s)
    return out.reshape(N, C, H, W)


# ----------------------------------------------------------------------------
# Parameters / reference / test.
# ----------------------------------------------------------------------------
def _init_params(key, channels, reduction):
    cr = channels // reduction
    k1, k2 = jax.random.split(key)
    bound1 = (6.0 / (channels + cr)) ** 0.5          # fc1: xavier_uniform
    w1 = jax.random.uniform(k1, (cr, channels), jnp.float32, -bound1, bound1)
    bound2 = 1.0 / (cr ** 0.5)                       # fc2: Conv2d default init
    w2 = jax.random.uniform(k2, (channels, cr), jnp.float32, -bound2, bound2)
    return w1, w2


def _reference(x, w1, w2):
    xf = x.astype(jnp.float32)
    pooled = jnp.mean(xf, axis=(2, 3))                          # (N, C)
    h = jnp.maximum(pooled @ w1.astype(jnp.float32).T, 0.0)     # (N, Cr)
    s = jax.nn.sigmoid(h @ w2.astype(jnp.float32).T)            # (N, C)
    return xf * s[:, :, None, None]


if __name__ == "__main__":
    key = jax.random.PRNGKey(0)
    k1, k2, k3, k4, k5, k6 = jax.random.split(key, 6)

    # 1) Single-pass path, f32, non-divisible batch (exercises the tail block).
    N, C, H, W = 3, 4, 16, 16
    x = jax.random.normal(k1, (N, C, H, W), jnp.float32)
    w1, w2 = _init_params(k2, C, 2)
    out = se_module(x, w1, w2, block_budget_bytes=50_000)    # forces nb=2, grid=2
    jax.block_until_ready(out)
    assert out.shape == (N, C, H, W) and out.dtype == x.dtype
    assert jnp.allclose(out, _reference(x, w1, w2), atol=1e-5, rtol=1e-5)

    # 2) Single-pass path, bf16 activations / bf16 weights (late-stage SE shape).
    N2, C2, H2, W2 = 2, 128, 7, 7
    x2 = jax.random.normal(k3, (N2, C2, H2, W2), jnp.float32).astype(jnp.bfloat16)
    w12, w22 = _init_params(k4, C2, 16)
    out2 = se_module(x2, w12, w22)
    jax.block_until_ready(out2)
    ref2 = _reference(x2, w12.astype(jnp.bfloat16), w22.astype(jnp.bfloat16))
    assert out2.shape == (N2, C2, H2, W2) and out2.dtype == jnp.bfloat16
    assert jnp.allclose(out2.astype(jnp.float32), ref2, atol=2e-2, rtol=2e-2)

    # 3) Two-phase HW-tiled path (forced via a tiny block budget), with a
    #    partial trailing HW tile (H*W = 400 -> tiles of 128).
    N3, C3, H3, W3 = 3, 8, 20, 20
    x3 = jax.random.normal(k5, (N3, C3, H3, W3), jnp.float32)
    w13, w23 = _init_params(k6, C3, 2)
    out3 = se_module(x3, w13, w23, block_budget_bytes=4_096)
    jax.block_until_ready(out3)
    assert out3.shape == (N3, C3, H3, W3)
    assert jnp.allclose(out3, _reference(x3, w13, w23), atol=1e-5, rtol=1e-5)

    print("KERNEL_OK")
</pallas_src>

<mosaic_0001>
module attributes {stable_mosaic.version = 11 : i64} {
  func.func @_se_kernel(%arg0: i32, %arg1: memref<2x4x256xf32, #tpu.memory_space<vmem>>, %arg2: memref<4x2xf32, #tpu.memory_space<vmem>>, %arg3: memref<2x4xf32, #tpu.memory_space<vmem>>, %arg4: memref<2x4x256xf32, #tpu.memory_space<vmem>>) attributes {dimension_semantics = [#tpu.dimension_semantics<parallel>], iteration_bounds = array<i64: 2>, scalar_prefetch = 0 : i64, scratch_operands = 0 : i64, tpu.core_type = #tpu.core_type<tc>, window_params = [{transform_indices = @transform_0, window_bounds = array<i64: 2, 4, 256>}, {pipeline_mode = #tpu.pipeline_mode<synchronous>, transform_indices = @transform_1, window_bounds = array<i64: 4, 2>}, {pipeline_mode = #tpu.pipeline_mode<synchronous>, transform_indices = @transform_2, window_bounds = array<i64: 2, 4>}, {transform_indices = @transform_3, window_bounds = array<i64: 2, 4, 256>}]} {
    %c0 = arith.constant 0 : index
    %c0_0 = arith.constant 0 : index
    %c0_1 = arith.constant 0 : index
    %0 = vector.load %arg1[%c0, %c0_0, %c0_1] : memref<2x4x256xf32, #tpu.memory_space<vmem>>, vector<2x4x256xf32>
    %cst = arith.constant dense<0.000000e+00> : vector<2x4xf32>
    %1 = vector.multi_reduction <add>, %0, %cst [2] : vector<2x4x256xf32> to vector<2x4xf32>
    %cst_2 = arith.constant 3.906250e-03 : f32
    %2 = vector.broadcast %cst_2 : f32 to vector<2x4xf32>
    %3 = arith.mulf %1, %2 : vector<2x4xf32>
    %c0_3 = arith.constant 0 : index
    %c0_4 = arith.constant 0 : index
    %4 = vector.load %arg2[%c0_3, %c0_4] : memref<4x2xf32, #tpu.memory_space<vmem>>, vector<4x2xf32>
    %cst_5 = arith.constant dense<0.000000e+00> : vector<2x2xf32>
    %5 = tpu.matmul %3, %4, %cst_5 {dimension_numbers = #tpu.dot_dimension_numbers<[1], [0], [0], [1], [0, 0, 1, 1], [], []>} : vector<2x4xf32>, vector<4x2xf32>, vector<2x2xf32> -> vector<2x2xf32>
    %cst_6 = arith.constant 0.000000e+00 : f32
    %6 = vector.broadcast %cst_6 : f32 to vector<2x2xf32>
    %7 = arith.maximumf %5, %6 : vector<2x2xf32>
    %c0_7 = arith.constant 0 : index
    %c0_8 = arith.constant 0 : index
    %8 = vector.load %arg3[%c0_7, %c0_8] : memref<2x4xf32, #tpu.memory_space<vmem>>, vector<2x4xf32>
    %cst_9 = arith.constant dense<0.000000e+00> : vector<2x4xf32>
    %9 = tpu.matmul %7, %8, %cst_9 {dimension_numbers = #tpu.dot_dimension_numbers<[1], [0], [0], [1], [0, 0, 1, 1], [], []>} : vector<2x2xf32>, vector<2x4xf32>, vector<2x4xf32> -> vector<2x4xf32>
    %10 = arith.negf %9 : vector<2x4xf32>
    %11 = math.exp %10 : vector<2x4xf32>
    %cst_10 = arith.constant 1.000000e+00 : f32
    %12 = vector.broadcast %cst_10 : f32 to vector<2x4xf32>
    %13 = arith.addf %12, %11 : vector<2x4xf32>
    %14 = arith.divf %12, %13 : vector<2x4xf32>
    %c0_11 = arith.constant 0 : index
    %c0_12 = arith.constant 0 : index
    %c0_13 = arith.constant 0 : index
    %15 = vector.load %arg1[%c0_11, %c0_12, %c0_13] : memref<2x4x256xf32, #tpu.memory_space<vmem>>, vector<2x4x256xf32>
    %16 = vector.shape_cast %14 : vector<2x4xf32> to vector<2x4x1xf32>
    %17 = vector.broadcast %16 : vector<2x4x1xf32> to vector<2x4x256xf32>
    %18 = arith.mulf %15, %17 : vector<2x4x256xf32>
    %c0_14 = arith.constant 0 : index
    %c0_15 = arith.constant 0 : index
    %c0_16 = arith.constant 0 : index
    %19 = vector.load %arg4[%c0_14, %c0_15, %c0_16] : memref<2x4x256xf32, #tpu.memory_space<vmem>>, vector<2x4x256xf32>
    tpu.vector_store %arg4[%c0_14, %c0_15, %c0_16], %18 {strides = array<i32>} : memref<2x4x256xf32, #tpu.memory_space<vmem>>, vector<2x4x256xf32>,
    return
  }
  func.func @transform_0(%arg0: i32) -> (i32, i32, i32) {
    %c0_i32 = arith.constant 0 : i32
    %c0_i32_0 = arith.constant 0 : i32
    %c0_i32_1 = arith.constant 0 : i32
    return %arg0, %c0_i32, %c0_i32_0 : i32, i32, i32
  }
  func.func @transform_1(%arg0: i32) -> (i32, i32) {
    %c0_i32 = arith.constant 0 : i32
    %c0_i32_0 = arith.constant 0 : i32
    %c0_i32_1 = arith.constant 0 : i32
    return %c0_i32, %c0_i32_0 : i32, i32
  }
  func.func @transform_2(%arg0: i32) -> (i32, i32) {
    %c0_i32 = arith.constant 0 : i32
    %c0_i32_0 = arith.constant 0 : i32
    %c0_i32_1 = arith.constant 0 : i32
    return %c0_i32, %c0_i32_0 : i32, i32
  }
  func.func @transform_3(%arg0: i32) -> (i32, i32, i32) {
    %c0_i32 = arith.constant 0 : i32
    %c0_i32_0 = arith.constant 0 : i32
    %c0_i32_1 = arith.constant 0 : i32
    return %arg0, %c0_i32, %c0_i32_0 : i32, i32, i32
  }
}

</mosaic_0001>

<bundles_post_ra>
// kernel: tpu_custom_call.1
= control target key start
LH: loop header
LB: loop body
LE: loop exit
PB: predicated region body
PF: predicated region fallthrough
CT: control target
= control target key end

     0   :  { %8 = vsyncpa [#allocation3], 0  ;;  %s957_s0 = inlined_call_operand.hbm [shape: f32[3,4,256], index: 0, kind: input, shape index: {}]   ;;  %s958_s1 = inlined_call_operand.vmem [shape: f32[4,2], index: 1, kind: input, shape index: {}]   ;;  %s959_s2 = inlined_call_operand.vmem [shape: f32[2,4], index: 2, kind: input, shape index: {}]   ;;  %s960_s3 = inlined_call_operand.hbm [shape: f32[3,4,256], index: 3, kind: output, shape index: {}]  }
   0x1   :  { %10 = vsyncpa [#allocation3 + $0x1], 0 }
   0x2   :  { %11 = vsyncpa [#allocation4], 0 }
   0x3   :  { %13 = vsyncpa [#allocation4 + $0x1], 0  ;;  %s766_s12 = smov 0   ;;  %s768_s13 = smov 0  }
   0x4   :  { %s770_s14 = smov 0   ;;  %s772_s15 = smov 0  }
   0x5 LB: > { %s787_s16 = sadd.s32 4294967295, %s735_s15   ;;  %s538_s17 = sadd.s32 4294967294, %s735_s15   ;;  %s735_s15 = sphi %s772_s15, %s970_s15   ;;  %s731_s14 = sphi %s770_s14, %s969_s14   ;;  %s727_s13 = sphi %s768_s13, %s968_s13   ;;  %s723_s12 = sphi %s766_s12, %s967_s12  }
   0x6   : > { %s791_s18 = sadd.s32 1, %s735_s15   ;;  %s26_s19 = sadd.s32 1, %s731_s14 }
   0x7   : > { %s23_s20 = ssub.s32 %s735_s15, %s791_s18  ;;  %p33_p0 = scmp.ne.s32.totalorder %s731_s14, %s727_s13 }
   0x8   : > { %p24_p1 = scmp.eq.s32.totalorder %s23_s20, 0  ;;  %p34_p2 = scmp.eq.s32.totalorder %s735_s15, 0 }
   0x9   : > { %p39_p3 = scmp.ne.s32.totalorder %s727_s13, %s723_s12  ;;  %p40_p4 = scmp.eq.s32.totalorder %s787_s16, 0 }
   0xa   : > { %s803_s21 = scalar_select %p24_p1, %s731_s14, %s26_s19  }
   0xb   : > { %p35_p5 = por %p34_p2, %p33_p0  ;;  %p805_p6 = por %p40_p4, %p39_p3 }
   0xc   : > { %p105_p7 = scmp.eq.s32.totalorder %s787_s16, 1  ;;  %p111_p8 = scmp.eq.s32.totalorder %s538_s17, 1 }
   0xd   : > { %p961_p11 = scmp.ge.s32.totalorder %s735_s15, 2 }
   0xe   : > { %p810_p9 = por %p105_p7, %p33_p0  ;;  %p814_p10 = por %p111_p8, %p39_p3 }
   0xf   : > { %133 = sbr.rel (%p961_p11) target bundleno = 57 (0x39), region = 24 }
  0x10   : > { %s964_s24 = scalar_select %p814_p10, 1, 0 }
  0x16   : > { %136 = sbr.rel (!%p35_p5) target bundleno = 57 (0x39), region = 28  ;;  %s137_s25 = sand.u32 (%p35_p5), 1, %s731_s14  }
  0x17   : > { %s542_s26 = sshll.u32 (%p35_p5), %s735_s15, 1  ;;  %s541_s27 = sshll.u32 (%p35_p5), %s137_s25, 4 }
  0x18   : > { %s143_s28 = ssub.s32 (%p35_p5), 3, %s542_s26  ;;  %s826_s4 = scalar_lea.sflag (%p35_p5), [#allocation3], %s137_s25 }
  0x19   : > { %p144_p12 = scmp.lt.s32.totalorder (%p35_p5), %s143_s28, 2  ;;  %s141_s5 = scalar_lea.vmem (%p35_p5), [#allocation2], %s541_s27 }
  0x1d   : > { %s972_s28 = smov (!%p144_p12, %s143_s28), 2 }
  0x1e   : > { %s823_s29 = sshll.u32 %s972_s28, 7 }
  0x1f   : > { %s149_s30 = ssub.s32 256, %s823_s29 }
  0x20   : > { %150 = vsyncadd %s826_s4, %s149_s30  ;;  %p545_p13 = scmp.ne.s32.totalorder %s823_s29, 0  ;;  %s571_s6 = sshll.u32 %s735_s15, 8 }
  0x21   : > { %s834_s9 = scalar_lea.hbm %s957_s0, %s571_s6  ;;  %s156_s10 = sshll.u32 %s141_s5, 4  ;;  %s836_s10 = int_to_ptr.vmem [resolvable:$true] %s156_s10 }
  0x22   : > { %s641_s11 = scalar_lea.hbm %s834_s9, %s823_s29  ;;  %s645_s20 = scalar_lea.hbm %s957_s0, 384 }
  0x23   : > { %p642_p0 = scmp.ne.s32.totalorder %s834_s9, %s641_s11  ;;  %p646_p3 = scmp.lt.u32.totalorder %s834_s9, %s957_s0 }
  0x24   : > { %p647_p4 = scmp.lt.u32.totalorder %s645_s20, %s641_s11  ;;  %p649_p7 = scmp.lt.u32.totalorder %s641_s11, %s834_s9 }
  0x25   : > { %p643_p1 = pnand %p642_p0, %p545_p13 }
  0x26   : > { %p648_p5 = por %p647_p4, %p646_p3 }
  0x27   : > { %p644_p2 = pneg %p643_p1 }
  0x28   : > { %p650_p8 = por %p649_p7, %p648_p5 }
  0x2a   : > { %p651_p12 = pnand %p650_p8, %p644_p2 }
  0x2c   : > { %654 = shalt.err (!%p651_p12)
}
  0x2d   : > { %s655_s27 = scalar_lea.vmem %s836_s10, %s823_s29  ;;  %s737_s28 = smov [#allocation2]  }
  0x2e   : > { %p656_p0 = scmp.ne.s32.totalorder %s836_s10, %s655_s27  ;;  %s659_s30 = sshll.u32 %s737_s28, 4  ;;  %s660_s30 = int_to_ptr.vmem [resolvable:$false] %s659_s30 }
  0x2f   : > { %s661_s5 = scalar_lea.vmem %s660_s30, 512  ;;  %p662_p10 = scmp.lt.s32.totalorder %s836_s10, %s660_s30 }
  0x30   : > { %p657_p1 = pnand %p656_p0, %p545_p13  ;;  %p663_p3 = scmp.lt.s32.totalorder %s661_s5, %s655_s27 }
  0x32   : > { %p658_p11 = pneg %p657_p1  ;;  %p664_p4 = por %p663_p3, %p662_p10 }
  0x34   : > { %p665_p5 = pnand %p664_p4, %p658_p11 }
  0x36   : > { %668 = shalt.err (!%p665_p5)
}
  0x37   : > { %s738_s6 = smov 128   ;;  %s739_s7 = smov 8  }
  0x38   : > { %162 = dma.hbm_to_vmem [thread:$0]  (%p545_p13), %s834_s9, %s823_s29, %s836_s10, %s826_s4, %s738_s6, %s738_s6, %s739_s7  }
  0x39 PF: > { %p550_p2 = scmp.ge.s32.totalorder %s735_s15, 1  ;;  %p164_p7 = scmp.lt.s32.totalorder %s735_s15, 3 }
  0x3b   : > { %p165_p8 = pnand %p550_p2, %p164_p7 }
  0x3c   : > { %s866_s8 = sand.u32 (!%p165_p8), 1, %s727_s13  }
  0x3d   : > { %168 = sbr.rel (%p165_p8) target bundleno = 832 (0x340), region = 32  ;;  %s551_s11 = sshll.u32 (!%p165_p8), %s866_s8, 4 }
  0x3e   : > { %s171_s17 = scalar_lea.sflag (!%p165_p8), [#allocation3], %s866_s8  ;;  %s174_s19 = scalar_lea.vmem (!%p165_p8), [#allocation2], %s551_s11 }
  0x44   : > { %714 = dma.done.wait (%p805_p6), %s171_s17, 256  }
  0x45   : > { %716 = vsyncadd (%p805_p6), %s171_s17, 4294967040  ;;  %vm217_vm0 = vcmask 1043456   ;;  %v209_v0 = vld [vmem:[%s174_s19] sm:$0xff]  ;;  %v876_v1 = vld [vmem:[%s174_s19 + $0x8] sm:$0xff]  ;;  %v740_v11 = vmov 0.0   ;;  %vm741_vm1 = vmmov 0   ;;  %v233_v12 = vlaneseq }
  0x46   : > { %v213_v2 = vcombine.high %v209_v0, %v209_v0  ;;  %v218_v3 = vsel %vm217_vm0, %v209_v0, 0.0  ;;  %v214_v4 = vcombine.high %v876_v1, %v876_v1  ;;  %v223_v6 = vsel %vm217_vm0, %v876_v1, 0.0  ;;  %v230_v10 = vld [vmem:[%s958_s1] sm:$0xf]  ;;  %579 = vmatprep.subr.mxu0 %v740_v11  ;;  %581 = vmatprep.mubr.msk.f32.mxu0 %vm741_vm1, %v740_v11  ;;  %s196_s10 = scalar_lea.vmem [#allocation5], %s551_s11  ;;  %s444_s20 = scalar_lea.sflag [#allocation4], %s866_s8 }
  0x47   : > { %580 = vmatpush3.msk.msra.mxu0 %vm217_vm0, %v230_v10  ;;  %584 = vmatprep.subr.mxu1 %v740_v11  ;;  %v234_v13 = vand.u32 127, %v233_v12  ;;  %v236_v14 = vshrl.u32 %v233_v12, 7  ;;  %vm243_vm2 = vcmask 1041409   ;;  %vm245_vm3 = vcmask 31744   ;;  %v322_v23 = vld [vmem:[%s959_s2] sm:$0x3] }
  0x48   : > { %v219_v5 = vsel %vm217_vm0, %v213_v2, 0.0  ;;  %v224_v7 = vsel %vm217_vm0, %v214_v4, 0.0  ;;  %586 = vmatprep.mubr.msk.f32.mxu1 %vm741_vm1, %v740_v11  ;;  %vm327_vm4 = vcmask 1041408   ;;  %vm323_vm5 = vcmask 15360   ;;  %s559_s25 = sshll.u32 (%p810_p9), %s787_s16, 1 }
  0x49   : > { %v220_v8 = vadd.f32 %v219_v5, %v218_v3  ;;  %v225_v9 = vadd.f32 %v224_v7, %v223_v6  ;;  %v237_v16 = vsub.s32 %v234_v13, %v236_v14  ;;  %585 = vmatpush3.msk.msra.mxu1 %vm327_vm4, %v322_v23  ;;  %v409_v32 = vsub.s32 0, %v236_v14  ;;  %s452_s26 = ssub.s32 (%p810_p9), 3, %s559_s25 }
  0x4a   : > { %v416_v35 = vsub.s32 1, %v236_v14  ;;  %v742_v37 = vmov 839922192   ;;  %p453_p6 = scmp.lt.s32.totalorder (%p810_p9), %s452_s26, 2 }
  0x4b   : > { %221 = vadd.xlane.f32.xlu0 %v220_v8  ;;  %v424_v38 = vunpack.c.l.s4 %v742_v37 }
  0x4d   : > { %v425_v39 = vunpack.c.0.s8 %v424_v38 }
  0x4f   : > { %226 = vadd.xlane.f32.xlu0 %v225_v9  ;;  %v428_v40 = vsub.s32 %v425_v39, %v236_v14 }
  0xd8   : > { %v222_v15 = vpop.xlane.xlu0 %221 }
  0xd9   : > { %v228_v17 = vmul.f32 0.00390625, %v222_v15 }
  0xdb   : > { %v238_v20 = vrot.slane %v228_v17, %v237_v16 }
  0xdc   : > { %v227_v18 = vpop.xlane.xlu0 %226 }
  0xdd   : > { %v229_v19 = vmul.f32 0.00390625, %v227_v18 }
  0xdf   : > { %v242_v21 = vrot.slane %v229_v19, %v237_v16 }
  0xe1   : > { %v244_v22 = vsel %vm243_vm2, %v242_v21, %v238_v20 }
  0xe2   : > { %582 = vmatmul.mubr.msk.f32.vlgmr.msra.gmra.mrb[0].mxu0 %vm245_vm3, %v244_v22 }
 0x1b5   : > { %v317_v24 = vpop.f32.mrb[0].mxu0 }
 0x1b6   : > { %v321_v25 = vmax.f32 %v317_v24, 0.0  ;;  %v583_v26 = vpop.f32.mrb[1].mxu0 }
 0x1b8   : > { %587 = vmatmul.mubr.msk.f32.vlgmr.msra.gmra.mrb[0].mxu1 %vm323_vm5, %v321_v25 }
 0x28b   : > { %v397_v27 = vpop.f32.mrb[0].mxu1 }
 0x28c   : > { %v557_v28 = vmul.f32 -1.442695, %v397_v27  ;;  %v588_v29 = vpop.f32.mrb[1].mxu1 }
 0x28e   : > { %637 = vpow2.f32 %v557_v28 }
 0x298   : > { %v638_v30 = vpop.eup %637 }
 0x299   : > { %v404_v31 = vadd.f32 1.0, %v638_v30 }
 0x29b   : > { %639 = vrcp.f32 %v404_v31 }
 0x2a5   : > { %v640_v33 = vpop.eup %639 }
 0x2a6   : > { %v410_v34 = vrot.slane %v640_v33, %v409_v32  ;;  %v417_v36 = vrot.slane %v640_v33, %v416_v35 }
 0x2a8   : > { %412 = vbcast.lane.b32.xlu1 %v410_v34, 256 }
 0x2ac   : > { %419 = vbcast.lane.b32.xlu1 %v417_v36, 256 }
 0x31a   : > { %v413_v41 = vpop.permute.xlu1 %412 }
 0x31b   : > { %v429_v42 = vrot.slane %v413_v41, %v428_v40 }
 0x31d   : > { %v439_v43 = vmul.f32 %v429_v42, %v209_v0  ;;  %450 = sbr.rel (!%p810_p9) target bundleno = 832 (0x340), region = 40 }
 0x31e   : > { %v420_v44 = vpop.permute.xlu1 %419 }
 0x31f   : > { %441 = vst [vmem:[%s196_s10] sm:$0xff] %v439_v43  ;;  %v436_v45 = vrot.slane %v420_v44, %v428_v40 }
 0x321   : > { %v440_v46 = vmul.f32 %v436_v45, %v876_v1 }
 0x323   : > { %442 = vst [vmem:[%s196_s10 + $0x8] sm:$0xff] %v440_v46 }
 0x324   : > { %s974_s26 = smov (!%p453_p6, %s452_s26), 2 }
 0x325   : > { %s899_s27 = sshll.u32 %s974_s26, 7 }
 0x326   : > { %s458_s28 = ssub.s32 256, %s899_s27 }
 0x327   : > { %459 = vsyncadd %s444_s20, %s458_s28  ;;  %p562_p10 = scmp.ne.s32.totalorder %s899_s27, 0  ;;  %s574_s30 = sshll.u32 %s787_s16, 8 }
 0x328   : > { %s909_s6 = scalar_lea.hbm %s960_s3, %s574_s30  ;;  %s465_s7 = sshll.u32 %s196_s10, 4  ;;  %s911_s7 = int_to_ptr.vmem [resolvable:$true] %s465_s7 }
 0x329   : > { %s669_s11 = scalar_lea.vmem %s911_s7, %s899_s27  ;;  %s743_s17 = smov [#allocation5]  }
 0x32a   : > { %p670_p9 = scmp.ne.s32.totalorder %s911_s7, %s669_s11  ;;  %s673_s19 = sshll.u32 %s743_s17, 4  ;;  %s674_s19 = int_to_ptr.vmem [resolvable:$false] %s673_s19 }
 0x32b   : > { %s675_s16 = scalar_lea.vmem %s674_s19, 512  ;;  %p676_p12 = scmp.lt.s32.totalorder %s911_s7, %s674_s19 }
 0x32c   : > { %p671_p11 = pnand %p670_p9, %p562_p10  ;;  %p677_p0 = scmp.lt.s32.totalorder %s675_s16, %s669_s11 }
 0x32e   : > { %p672_p13 = pneg %p671_p11  ;;  %p678_p1 = por %p677_p0, %p676_p12 }
 0x330   : > { %p679_p3 = pnand %p678_p1, %p672_p13 }
 0x332   : > { %682 = shalt.err (!%p679_p3)
}
 0x333   : > { %s683_s22 = scalar_lea.hbm %s909_s6, %s899_s27  ;;  %s687_s9 = scalar_lea.hbm %s960_s3, 384 }
 0x334   : > { %p684_p4 = scmp.ne.s32.totalorder %s909_s6, %s683_s22  ;;  %p688_p7 = scmp.lt.u32.totalorder %s909_s6, %s960_s3 }
 0x335   : > { %p689_p8 = scmp.lt.u32.totalorder %s687_s9, %s683_s22  ;;  %p691_p9 = scmp.lt.u32.totalorder %s683_s22, %s909_s6 }
 0x336   : > { %p685_p5 = pnand %p684_p4, %p562_p10 }
 0x337   : > { %p690_p6 = por %p689_p8, %p688_p7 }
 0x338   : > { %p686_p2 = pneg %p685_p5 }
 0x339   : > { %p692_p11 = por %p691_p9, %p690_p6 }
 0x33b   : > { %p693_p13 = pnand %p692_p11, %p686_p2 }
 0x33d   : > { %696 = shalt.err (!%p693_p13)
}
 0x33e   : > { %s744_s26 = smov 128   ;;  %s745_s28 = smov 8  }
 0x33f   : > { %471 = dma.vmem_to_hbm [thread:$0]  (%p562_p10), %s911_s7, %s899_s27, %s909_s6, %s444_s20, %s744_s26, %s744_s26, %s745_s28  }
 0x340 PF: > { %s480_s30 = sand.u32 1, %s723_s12   ;;  %p965_p12 = scmp.ne.s32.totalorder %s964_s24, 0 }
 0x341   : > { %p966_p0 = scmp.ge.s32.totalorder %s735_s15, 2  ;;  %s481_s23 = scalar_lea.sflag [#allocation4], %s480_s30 }
 0x343   : > { %p592_p1 = pnand %p966_p0, %p965_p12 }
 0x345   : > { %718 = dma.done.wait (!%p592_p1), %s481_s23, 256  }
 0x346   : > { %720 = vsyncadd (!%p592_p1), %s481_s23, 4294967040  ;;  %p16_p3 = scmp.ge.s32.totalorder %s791_s18, 4   ;;  %s967_s12 = smov %s727_s13 }
 0x347   : > { %s968_s13 = smov %s731_s14  ;;  %s969_s14 = smov %s803_s21 }
 0x348   : > { %s970_s15 = smov %s791_s18  ;;  %18 = sbr.rel (!%p16_p3) target bundleno = 5 (0x5), region = 77 }
 0x34f   :  { %486 = vsyncpa [#allocation3], 1 }
 0x350   :  { %488 = vsyncpa [#allocation3 + $0x1], 1 }
 0x351   :  { %489 = vsyncpa [#allocation4], 1 }
 0x352   :  { %491 = vsyncpa [#allocation4 + $0x1], 1 }

</bundles_post_ra>
